<compile_context>
chip_gen: v7x
topology: tpu7x:2x2x1
jax: 0.10.0
libtpu: 0.0.40
codegen_flags: <defaults>
</compile_context>

<pallas_src>
import functools

import jax
import jax.numpy as jnp
from jax import lax
from jax.experimental import pallas as pl


def _fglnet_fused_kernel(x2_ref, adj_ref, smalls_ref, w2p_ref, out_ref, *,
                         batch, cin, nout, midc, ydim):
    """Fused aggregate -> mix -> tanh -> classifier head (no scratch, no grid).

    x2_ref:     (B*Cin, Nin_pad)   row b*Cin + c = x[b, c, :] (zero-padded lanes)
    adj_ref:    (Nout, Nin_pad)    dense 0/1 adjacency (zero-padded lanes)
    smalls_ref: (midc*B, B*Cin + 1 + ydim) packed tiny params:
                  [:, :B*Cin]              block-diagonal W1^T (row index m*B + b)
                  [:, B*Cin]               b1 replicated per batch
                  [0, B*Cin+1 : +ydim]     b2
    w2p_ref:    (midc*Nout, ydim)  W2 rows permuted: w2p[m*Nout + o] = W2[o*midc + m]
    out_ref:    (B, ydim)          logits
    """
    bc = batch * cin

    # (1) Aggregation, all batches fused on the MXU M axis (single K=Nin_pad contraction):
    #     agg_all[b*Cin + c, o] = sum_i x[b, c, i] * adj[o, i]
    agg_all = lax.dot_general(
        x2_ref[...], adj_ref[...],
        dimension_numbers=(((1,), (1,)), ((), ())),
        preferred_element_type=jnp.float32)                  # (B*Cin, Nout)

    # (2) Channel mixing + bias + tanh for every batch in one matmul via block-diag W1^T:
    #     h_all[m*B + b, o] = tanh(sum_c W1[c, m] * agg_all[b*Cin + c, o] + b1[m])
    w1bd = smalls_ref[:, 0:bc]                               # (midc*B, B*Cin)
    b1col = smalls_ref[:, bc:bc + 1]                         # (midc*B, 1)
    b2row = smalls_ref[0:1, bc + 1:bc + 1 + ydim]            # (1, ydim)
    h_all = jnp.tanh(
        jnp.dot(w1bd, agg_all, preferred_element_type=jnp.float32) + b1col
    )                                                        # (midc*B, Nout)

    # (3) Head: logits[b, y] = b2[y] + sum_m sum_o h_all[m*B + b, o] * w2p[m*Nout + o, y].
    #     midc register-resident matmuls replace the flatten; no vector stores at all.
    logits = b2row
    for m in range(midc):                                    # midc is tiny and static: unrolled
        h_m = h_all[m * batch:(m + 1) * batch, :]            # (B, Nout) static sublane slice
        w_m = w2p_ref[m * nout:(m + 1) * nout, :]            # (Nout, ydim) static ref slice
        logits = logits + jnp.dot(h_m, w_m, preferred_element_type=jnp.float32)

    out_ref[...] = logits.astype(out_ref.dtype)


def fglnet_forward(x, adj, w1, b1, w2, b2):
    """x: (B, Cin, Nin) channel-major (PyTorch NCL layout). Returns (B, ydim) logits."""
    B, Cin, Nin = x.shape
    Nout = adj.shape[0]
    midc = w1.shape[1]
    ydim = w2.shape[1]

    # ---- trace-time (outside the kernel) operand massaging -------------------------------
    # Zero-pad the contraction axis to a clean MXU K multiple (256 covers v6e/v7x's 256-wide
    # K chunks and is also a multiple of 128 for v5e); padded lanes are explicit zeros.
    nin_pad = ((Nin + 255) // 256) * 256
    x2 = jnp.pad(x.reshape(B * Cin, Nin).astype(jnp.float32),
                 ((0, 0), (0, nin_pad - Nin)))                       # (B*Cin, Nin_pad)
    adj_p = jnp.pad(adj.astype(jnp.float32), ((0, 0), (0, nin_pad - Nin)))  # (Nout, Nin_pad)

    # Block-diagonal W1^T so ONE matmul mixes channels for every batch:
    #   w1bd[m*B + b, b'*Cin + c] = W1[c, m] * (b == b')
    w1bd = jnp.einsum("cm,bp->mbpc", w1.astype(jnp.float32),
                      jnp.eye(B, dtype=jnp.float32)).reshape(midc * B, B * Cin)
    b1rep = jnp.repeat(b1.astype(jnp.float32), B)                    # row m*B + b -> b1[m]

    # Row-permute W2 once so the m-major head accumulation reproduces .view(B, -1)'s
    # node-major order:  w2p[m*Nout + o, :] == w2[o*midc + m, :]
    w2p = (w2.astype(jnp.float32)
             .reshape(Nout, midc, ydim).transpose(1, 0, 2).reshape(midc * Nout, ydim))

    # Pack all tiny parameters (block-diag W1^T, b1, b2) into ONE operand to cut the
    # per-operand DMA-issue overhead (the kernel is launch / DMA-setup bound at this size).
    bc = B * Cin
    smalls = jnp.zeros((midc * B, bc + 1 + ydim), jnp.float32)
    smalls = smalls.at[:, :bc].set(w1bd)
    smalls = smalls.at[:, bc].set(b1rep)
    smalls = smalls.at[0, bc + 1:].set(b2.astype(jnp.float32))

    kernel = functools.partial(_fglnet_fused_kernel,
                               batch=B, cin=Cin, nout=Nout, midc=midc, ydim=ydim)

    return pl.pallas_call(
        kernel,
        out_shape=jax.ShapeDtypeStruct((B, ydim), jnp.float32),
    )(x2, adj_p, smalls, w2p)


# ---------------- reference (plain JAX) for sanity ----------------

def fglnet_reference(x, adj, w1, b1, w2, b2):
    # x: (B, Cin, Nin) channel-major
    agg = jnp.einsum("oi,bci->boc", adj, x)                          # (B, Nout, Cin)
    h = jnp.tanh(jnp.einsum("boc,cm->bom", agg, w1) + b1[None, None, :])
    flat = h.reshape(x.shape[0], -1)                                 # node-major: o*midc + m
    return flat @ w2 + b2[None, :]


if __name__ == "__main__":
    # Shapes implied by the module: in_nodes=784 (28x28), inc=3, midc=8,
    # out_nodes=len(adj_list)=16, ydim=10, batch=2.
    B, Cin, Nin = 2, 3, 784
    Nout, midc, ydim = 16, 8, 10

    key = jax.random.PRNGKey(0)
    kx, kw1, kb1, kw2, kb2 = jax.random.split(key, 5)

    x = jax.random.normal(kx, (B, Cin, Nin), dtype=jnp.float32)      # PyTorch NCL layout

    # Deterministic adj_list: output node j owns the contiguous block of
    # Nin // Nout input nodes starting at j * (Nin // Nout).
    blk = Nin // Nout  # 49
    rows = jnp.repeat(jnp.arange(Nout), blk)
    cols = jnp.arange(Nout * blk)
    adj = jnp.zeros((Nout, Nin), dtype=jnp.float32).at[rows, cols].set(1.0)

    w1 = jax.random.normal(kw1, (Cin, midc), dtype=jnp.float32) * 0.1
    b1 = jax.random.normal(kb1, (midc,), dtype=jnp.float32) * 0.1
    w2 = jax.random.normal(kw2, (Nout * midc, ydim), dtype=jnp.float32) * 0.1
    b2 = jax.random.normal(kb2, (ydim,), dtype=jnp.float32) * 0.1

    out = jax.block_until_ready(fglnet_forward(x, adj, w1, b1, w2, b2))
    ref = fglnet_reference(x, adj, w1, b1, w2, b2)

    assert out.shape == (B, ydim), out.shape
    assert jnp.allclose(out, ref, atol=1e-4, rtol=1e-4), "mismatch vs JAX reference"

    print("KERNEL_OK")
</pallas_src>

<mosaic_0001>
module attributes {stable_mosaic.version = 11 : i64} {
  func.func @_fglnet_fused_kernel(%arg0: memref<6x1024xf32, #tpu.memory_space<vmem>>, %arg1: memref<16x1024xf32, #tpu.memory_space<vmem>>, %arg2: memref<16x17xf32, #tpu.memory_space<vmem>>, %arg3: memref<128x10xf32, #tpu.memory_space<vmem>>, %arg4: memref<2x10xf32, #tpu.memory_space<vmem>>) attributes {dimension_semantics = [], scalar_prefetch = 0 : i64, scratch_operands = 0 : i64, tpu.core_type = #tpu.core_type<tc>} {
    %c0 = arith.constant 0 : index
    %c0_0 = arith.constant 0 : index
    %0 = vector.load %arg0[%c0, %c0_0] : memref<6x1024xf32, #tpu.memory_space<vmem>>, vector<6x1024xf32>
    %c0_1 = arith.constant 0 : index
    %c0_2 = arith.constant 0 : index
    %1 = vector.load %arg1[%c0_1, %c0_2] : memref<16x1024xf32, #tpu.memory_space<vmem>>, vector<16x1024xf32>
    %cst = arith.constant dense<0.000000e+00> : vector<6x16xf32>
    %2 = tpu.matmul %0, %1, %cst {dimension_numbers = #tpu.dot_dimension_numbers<[1], [1], [0], [0], [0, 0, 1, 0], [], []>} : vector<6x1024xf32>, vector<16x1024xf32>, vector<6x16xf32> -> vector<6x16xf32>
    %c0_3 = arith.constant 0 : index
    %c0_4 = arith.constant 0 : index
    %3 = vector.load %arg2[%c0_3, %c0_4] : memref<16x17xf32, #tpu.memory_space<vmem>>, vector<16x6xf32>
    %c0_5 = arith.constant 0 : index
    %c6 = arith.constant 6 : index
    %4 = vector.load %arg2[%c0_5, %c6] : memref<16x17xf32, #tpu.memory_space<vmem>>, vector<16x1xf32>
    %c0_6 = arith.constant 0 : index
    %c7 = arith.constant 7 : index
    %5 = vector.load %arg2[%c0_6, %c7] : memref<16x17xf32, #tpu.memory_space<vmem>>, vector<1x10xf32>
    %cst_7 = arith.constant dense<0.000000e+00> : vector<16x16xf32>
    %6 = tpu.matmul %3, %2, %cst_7 {dimension_numbers = #tpu.dot_dimension_numbers<[1], [0], [0], [1], [0, 0, 1, 1], [], []>} : vector<16x6xf32>, vector<6x16xf32>, vector<16x16xf32> -> vector<16x16xf32>
    %7 = vector.broadcast %4 : vector<16x1xf32> to vector<16x16xf32>
    %8 = arith.addf %6, %7 : vector<16x16xf32>
    %9 = math.tanh %8 : vector<16x16xf32>
    %10 = vector.extract_strided_slice %9 {offsets = [0, 0], sizes = [2, 16], strides = [1, 1]} : vector<16x16xf32> to vector<2x16xf32>
    %c0_8 = arith.constant 0 : index
    %c0_9 = arith.constant 0 : index
    %11 = vector.load %arg3[%c0_8, %c0_9] : memref<128x10xf32, #tpu.memory_space<vmem>>, vector<16x10xf32>
    %cst_10 = arith.constant dense<0.000000e+00> : vector<2x10xf32>
    %12 = tpu.matmul %10, %11, %cst_10 {dimension_numbers = #tpu.dot_dimension_numbers<[1], [0], [0], [1], [0, 0, 1, 1], [], []>} : vector<2x16xf32>, vector<16x10xf32>, vector<2x10xf32> -> vector<2x10xf32>
    %13 = vector.broadcast %5 : vector<1x10xf32> to vector<2x10xf32>
    %14 = arith.addf %13, %12 : vector<2x10xf32>
    %15 = vector.extract_strided_slice %9 {offsets = [2, 0], sizes = [2, 16], strides = [1, 1]} : vector<16x16xf32> to vector<2x16xf32>
    %c16 = arith.constant 16 : index
    %c0_11 = arith.constant 0 : index
    %16 = vector.load %arg3[%c16, %c0_11] : memref<128x10xf32, #tpu.memory_space<vmem>>, vector<16x10xf32>
    %cst_12 = arith.constant dense<0.000000e+00> : vector<2x10xf32>
    %17 = tpu.matmul %15, %16, %cst_12 {dimension_numbers = #tpu.dot_dimension_numbers<[1], [0], [0], [1], [0, 0, 1, 1], [], []>} : vector<2x16xf32>, vector<16x10xf32>, vector<2x10xf32> -> vector<2x10xf32>
    %18 = arith.addf %14, %17 : vector<2x10xf32>
    %19 = vector.extract_strided_slice %9 {offsets = [4, 0], sizes = [2, 16], strides = [1, 1]} : vector<16x16xf32> to vector<2x16xf32>
    %c32 = arith.constant 32 : index
    %c0_13 = arith.constant 0 : index
    %20 = vector.load %arg3[%c32, %c0_13] : memref<128x10xf32, #tpu.memory_space<vmem>>, vector<16x10xf32>
    %cst_14 = arith.constant dense<0.000000e+00> : vector<2x10xf32>
    %21 = tpu.matmul %19, %20, %cst_14 {dimension_numbers = #tpu.dot_dimension_numbers<[1], [0], [0], [1], [0, 0, 1, 1], [], []>} : vector<2x16xf32>, vector<16x10xf32>, vector<2x10xf32> -> vector<2x10xf32>
    %22 = arith.addf %18, %21 : vector<2x10xf32>
    %23 = vector.extract_strided_slice %9 {offsets = [6, 0], sizes = [2, 16], strides = [1, 1]} : vector<16x16xf32> to vector<2x16xf32>
    %c48 = arith.constant 48 : index
    %c0_15 = arith.constant 0 : index
    %24 = vector.load %arg3[%c48, %c0_15] : memref<128x10xf32, #tpu.memory_space<vmem>>, vector<16x10xf32>
    %cst_16 = arith.constant dense<0.000000e+00> : vector<2x10xf32>
    %25 = tpu.matmul %23, %24, %cst_16 {dimension_numbers = #tpu.dot_dimension_numbers<[1], [0], [0], [1], [0, 0, 1, 1], [], []>} : vector<2x16xf32>, vector<16x10xf32>, vector<2x10xf32> -> vector<2x10xf32>
    %26 = arith.addf %22, %25 : vector<2x10xf32>
    %27 = vector.extract_strided_slice %9 {offsets = [8, 0], sizes = [2, 16], strides = [1, 1]} : vector<16x16xf32> to vector<2x16xf32>
    %c64 = arith.constant 64 : index
    %c0_17 = arith.constant 0 : index
    %28 = vector.load %arg3[%c64, %c0_17] : memref<128x10xf32, #tpu.memory_space<vmem>>, vector<16x10xf32>
    %cst_18 = arith.constant dense<0.000000e+00> : vector<2x10xf32>
    %29 = tpu.matmul %27, %28, %cst_18 {dimension_numbers = #tpu.dot_dimension_numbers<[1], [0], [0], [1], [0, 0, 1, 1], [], []>} : vector<2x16xf32>, vector<16x10xf32>, vector<2x10xf32> -> vector<2x10xf32>
    %30 = arith.addf %26, %29 : vector<2x10xf32>
    %31 = vector.extract_strided_slice %9 {offsets = [10, 0], sizes = [2, 16], strides = [1, 1]} : vector<16x16xf32> to vector<2x16xf32>
    %c80 = arith.constant 80 : index
    %c0_19 = arith.constant 0 : index
    %32 = vector.load %arg3[%c80, %c0_19] : memref<128x10xf32, #tpu.memory_space<vmem>>, vector<16x10xf32>
    %cst_20 = arith.constant dense<0.000000e+00> : vector<2x10xf32>
    %33 = tpu.matmul %31, %32, %cst_20 {dimension_numbers = #tpu.dot_dimension_numbers<[1], [0], [0], [1], [0, 0, 1, 1], [], []>} : vector<2x16xf32>, vector<16x10xf32>, vector<2x10xf32> -> vector<2x10xf32>
    %34 = arith.addf %30, %33 : vector<2x10xf32>
    %35 = vector.extract_strided_slice %9 {offsets = [12, 0], sizes = [2, 16], strides = [1, 1]} : vector<16x16xf32> to vector<2x16xf32>
    %c96 = arith.constant 96 : index
    %c0_21 = arith.constant 0 : index
    %36 = vector.load %arg3[%c96, %c0_21] : memref<128x10xf32, #tpu.memory_space<vmem>>, vector<16x10xf32>
    %cst_22 = arith.constant dense<0.000000e+00> : vector<2x10xf32>
    %37 = tpu.matmul %35, %36, %cst_22 {dimension_numbers = #tpu.dot_dimension_numbers<[1], [0], [0], [1], [0, 0, 1, 1], [], []>} : vector<2x16xf32>, vector<16x10xf32>, vector<2x10xf32> -> vector<2x10xf32>
    %38 = arith.addf %34, %37 : vector<2x10xf32>
    %39 = vector.extract_strided_slice %9 {offsets = [14, 0], sizes = [2, 16], strides = [1, 1]} : vector<16x16xf32> to vector<2x16xf32>
    %c112 = arith.constant 112 : index
    %c0_23 = arith.constant 0 : index
    %40 = vector.load %arg3[%c112, %c0_23] : memref<128x10xf32, #tpu.memory_space<vmem>>, vector<16x10xf32>
    %cst_24 = arith.constant dense<0.000000e+00> : vector<2x10xf32>
    %41 = tpu.matmul %39, %40, %cst_24 {dimension_numbers = #tpu.dot_dimension_numbers<[1], [0], [0], [1], [0, 0, 1, 1], [], []>} : vector<2x16xf32>, vector<16x10xf32>, vector<2x10xf32> -> vector<2x10xf32>
    %42 = arith.addf %38, %41 : vector<2x10xf32>
    %c0_25 = arith.constant 0 : index
    %c0_26 = arith.constant 0 : index
    %43 = vector.load %arg4[%c0_25, %c0_26] : memref<2x10xf32, #tpu.memory_space<vmem>>, vector<2x10xf32>
    tpu.vector_store %arg4[%c0_25, %c0_26], %42 {strides = array<i32>} : memref<2x10xf32, #tpu.memory_space<vmem>>, vector<2x10xf32>,
    return
  }
}

</mosaic_0001>

<bundles_post_ra>
// kernel: tpu_custom_call.1
= control target key start
LH: loop header
LB: loop body
LE: loop exit
PB: predicated region body
PF: predicated region fallthrough
CT: control target
= control target key end

     0   :  { %9 = vsyncpa [#allocation3], 0  ;;  %s1500_s0 = inlined_call_operand.hbm [shape: f32[6,1024], index: 0, kind: input, shape index: {}]   ;;  %s1501_s1 = inlined_call_operand.vmem [shape: f32[16,1024], index: 1, kind: input, shape index: {}]   ;;  %s1502_s2 = inlined_call_operand.vmem [shape: f32[16,17], index: 2, kind: input, shape index: {}]   ;;  %s1503_s3 = inlined_call_operand.vmem [shape: f32[128,10], index: 3, kind: input, shape index: {}]   ;;  %s1504_s4 = inlined_call_operand.hbm [shape: f32[2,10], index: 4, kind: output, shape index: {}]  }
   0x1   :  { %10 = vsyncpa [#allocation4], 0  ;;  %s1306_s15 = smov [#allocation2]   ;;  %s1258_s19 = scalar_lea.hbm %s1500_s0, 1024 }
   0x2   :  { %s17_s16 = sshll.u32 %s1306_s15, 4  ;;  %p1259_p0 = scmp.ne.s32.totalorder %s1500_s0, %s1258_s19  ;;  %s18_s16 = int_to_ptr.vmem [resolvable:$true] %s17_s16 }
   0x3   :  { %p1262_p1 = scmp.lt.u32.totalorder %s1258_s19, %s1500_s0 }
   0x5   :  { %p1264_p2 = pnand %p1262_p1, %p1259_p0 }
   0x7   :  { %1267 = shalt.err (!%p1264_p2)
}
   0x8   :  { %s1268_s24 = scalar_lea.vmem %s18_s16, 1024  ;;  %p1273_p4 = scmp.lt.s32.totalorder %s18_s16, %s18_s16 }
   0x9   :  { %p1269_p3 = scmp.ne.s32.totalorder %s18_s16, %s1268_s24  ;;  %p1274_p5 = scmp.lt.s32.totalorder %s1268_s24, %s1268_s24 }
   0xb   :  { %p1275_p6 = por %p1274_p5, %p1273_p4 }
   0xd   :  { %p1276_p7 = pnand %p1275_p6, %p1269_p3 }
   0xf   :  { %1279 = shalt.err (!%p1276_p7)
}
  0x10   :  { %20 = dma.hbm_to_vmem [thread:$0]  %s1500_s0, 1024, %s18_s16, [#allocation3]  }
  0x11   :  { %1302 = dma.done.wait [#allocation3], 1024  }
  0x12   :  { %1303 = vsyncadd [#allocation3], 4294966272  ;;  %v39_v0 = vld [vmem:[%s1501_s1 + $0x8] sm:$0xff]  ;;  %v38_v2 = vld [vmem:[%s1501_s1] sm:$0xff]  ;;  %vm347_vm0 = vcmask 48128   ;;  %v1307_v33 = vmov 6  }
  0x13   :  { %v47_v1 = vld [vmem:[%s1501_s1 + $0x48] sm:$0xff]  ;;  %v46_v4 = vld [vmem:[%s1501_s1 + $0x40] sm:$0xff]  ;;  %v41_v7 = vld [vmem:[%s1501_s1 + $0x18] sm:$0xff]  ;;  %1253 = vset.pattern.permute.xlu0 %v1307_v33  ;;  %vm352_vm1 = vcmask 1045504   ;;  %v1308_v39 = vmov 0.0|0.0   ;;  %vm1309_vm2 = vmmov 0  }
  0x14   :  { %v1199_v3 = vpack.c.bf16 %v47_v1, %v39_v0  ;;  %v31_v5 = vld [vmem:[#allocation2 + $0x8] sm:$0x3f]  ;;  %v1201_v6 = vpack.c.bf16 %v46_v4, %v38_v2  ;;  %v49_v8 = vld [vmem:[%s1501_s1 + $0x58] sm:$0xff]  ;;  %v40_v10 = vld [vmem:[%s1501_s1 + $0x10] sm:$0xff]  ;;  %v1310_v41 = vmov 0.0   ;;  %vm435_vm3 = vcmask 130048  }
  0x15   :  { %118 = vmatprep.mubr.f32.mxu0 %v31_v5  ;;  %v1203_v9 = vpack.c.bf16 %v49_v8, %v41_v7  ;;  %v48_v11 = vld [vmem:[%s1501_s1 + $0x50] sm:$0xff]  ;;  %v43_v12 = vld [vmem:[%s1501_s1 + $0x28] sm:$0xff]  ;;  %v30_v14 = vld [vmem:[#allocation2] sm:$0x3f]  ;;  %s1312_s14 = smov 121   ;;  %s1313_s15 = smov [#allocation5]  }
  0x16   :  { %1200 = vmatprep.subr.bf16.mxu0 %v1199_v3  ;;  %v51_v13 = vld [vmem:[%s1501_s1 + $0x68] sm:$0xff]  ;;  %v1205_v15 = vpack.c.bf16 %v48_v11, %v40_v10  ;;  %v33_v16 = vld [vmem:[#allocation2 + $0x18] sm:$0x3f]  ;;  %v42_v18 = vld [vmem:[%s1501_s1 + $0x20] sm:$0xff]  ;;  %s1090_s16 = sshll.u32 %s1313_s15, 4  ;;  %vm1082_vm4 = vcmask 74752   ;;  %s1091_s16 = int_to_ptr.vmem [resolvable:$true] %s1090_s16 }
  0x17   :  { %1202 = vmatpush1.bf16.xpose.msra.mxu0 %v1201_v6  ;;  %v1207_v17 = vpack.c.bf16 %v51_v13, %v43_v12  ;;  %v50_v19 = vld [vmem:[%s1501_s1 + $0x60] sm:$0xff]  ;;  %v45_v20 = vld [vmem:[%s1501_s1 + $0x38] sm:$0xff]  ;;  %v32_v22 = vld [vmem:[#allocation2 + $0x10] sm:$0x3f]  ;;  %p1285_p9 = scmp.lt.s32.totalorder %s1091_s16, %s1091_s16 }
  0x18   :  { %1204 = vmatprep.subr.bf16.mxu0 %v1203_v9  ;;  %v53_v21 = vld [vmem:[%s1501_s1 + $0x78] sm:$0xff]  ;;  %v1209_v23 = vpack.c.bf16 %v50_v19, %v42_v18  ;;  %v35_v24 = vld [vmem:[#allocation2 + $0x28] sm:$0x3f]  ;;  %v44_v26 = vld [vmem:[%s1501_s1 + $0x30] sm:$0xff] }
  0x19   :  { %v1211_v25 = vpack.c.bf16 %v53_v21, %v45_v20  ;;  %v52_v27 = vld [vmem:[%s1501_s1 + $0x70] sm:$0xff]  ;;  %v34_v28 = vld [vmem:[#allocation2 + $0x20] sm:$0x3f]  ;;  %v37_v30 = vld [vmem:[#allocation2 + $0x38] sm:$0x3f] }
  0x1a   :  { %v1213_v29 = vpack.c.bf16 %v52_v27, %v44_v26  ;;  %v36_v31 = vld [vmem:[#allocation2 + $0x30] sm:$0x3f]  ;;  %v334_v32 = vld [vmem:[%s1502_s2] sm:$0xff]  ;;  %v335_v34 = vld [vmem:[%s1502_s2 + $0x8] sm:$0xff] }
  0x1b   :  { %1140 = vmatprep.mubr.msk.f32.mxu1 %vm347_vm0, %v334_v32  ;;  %339 = vperm.xlu0 %1253, %v334_v32   ;;  %v433_v37 = vld [vmem:[%s1503_s3] sm:$0xff]  ;;  %v434_v38 = vld [vmem:[%s1503_s3 + $0x8] sm:$0xff]  ;;  %v518_v46 = vld [vmem:[%s1503_s3 + $0x10] sm:$0xff] }
  0x1c   :  { %v1216_v40 = vpack.c.bf16 %v434_v38, %v433_v37  ;;  %v519_v47 = vld [vmem:[%s1503_s3 + $0x18] sm:$0xff]  ;;  %v598_v50 = vld [vmem:[%s1503_s3 + $0x20] sm:$0xff]  ;;  %v599_v51 = vld [vmem:[%s1503_s3 + $0x28] sm:$0xff] }
  0x1d   :  { %v1219_v48 = vpack.c.bf16 %v519_v47, %v518_v46  ;;  %v1222_v54 = vpack.c.bf16 %v599_v51, %v598_v50  ;;  %v678_v56 = vld [vmem:[%s1503_s3 + $0x30] sm:$0xff]  ;;  %v679_v57 = vld [vmem:[%s1503_s3 + $0x38] sm:$0xff]  ;;  %v758_v60 = vld [vmem:[%s1503_s3 + $0x40] sm:$0xff] }
  0x1e   :  { %119 = vmatmul.mubr.f32.vlgmr.msra.gmra.mrb[0].mxu0 %v30_v14  ;;  %v1225_v58 = vpack.c.bf16 %v679_v57, %v678_v56  ;;  %v759_v61 = vld [vmem:[%s1503_s3 + $0x48] sm:$0xff]  ;;  %v838_v0 = vld [vmem:[%s1503_s3 + $0x50] sm:$0xff]  ;;  %v839_v1 = vld [vmem:[%s1503_s3 + $0x58] sm:$0xff] }
  0x1f   :  { %1206 = vmatpush1.bf16.xpose.msra.mxu0 %v1205_v15  ;;  %188 = vmatprep.mubr.f32.mxu0 %v33_v16  ;;  %v1228_v62 = vpack.c.bf16 %v759_v61, %v758_v60  ;;  %v1231_v2 = vpack.c.bf16 %v839_v1, %v838_v0  ;;  %v918_v3 = vld [vmem:[%s1503_s3 + $0x60] sm:$0xff]  ;;  %v919_v4 = vld [vmem:[%s1503_s3 + $0x68] sm:$0xff]  ;;  %v998_v8 = vld [vmem:[%s1503_s3 + $0x70] sm:$0xff] }
  0x20   :  { %1208 = vmatprep.subr.bf16.mxu0 %v1207_v17  ;;  %344 = vperm.xlu0 %1253, %v335_v34   ;;  %v1234_v6 = vpack.c.bf16 %v919_v4, %v918_v3  ;;  %v999_v9 = vld [vmem:[%s1503_s3 + $0x78] sm:$0xff]  ;;  %s1311_s3 = smov 7  }
  0x21   :  { %v1237_v10 = vpack.c.bf16 %v999_v9, %v998_v8 }
  0x26   :  { %189 = vmatmul.mubr.f32.vlgmr.msra.gmra.mrb[0].mxu0 %v32_v22 }
  0x27   :  { %1210 = vmatpush1.bf16.xpose.msra.mxu0 %v1209_v23  ;;  %258 = vmatprep.mubr.f32.mxu0 %v35_v24 }
  0x28   :  { %1212 = vmatprep.subr.bf16.mxu0 %v1211_v25 }
  0x2e   :  { %259 = vmatmul.mubr.f32.vlgmr.msra.gmra.mrb[0].mxu0 %v34_v28 }
  0x2f   :  { %1214 = vmatpush1.bf16.xpose.msra.mxu0 %v1213_v29  ;;  %328 = vmatprep.mubr.f32.mxu0 %v37_v30  ;;  %v1103_v30 = vld [vmem:[%s1502_s2] ss:$0 sm:$0xff]  ;;  %s1280_s2 = scalar_lea.vmem %s1091_s16, 32 }
  0x30   :  { %p1281_p8 = scmp.ne.s32.totalorder %s1091_s16, %s1280_s2  ;;  %p1286_p10 = scmp.lt.s32.totalorder %s1280_s2, %s1280_s2 }
  0x32   :  { %p1287_p11 = por %p1286_p10, %p1285_p9 }
  0x34   :  { %p1288_p12 = pnand %p1287_p11, %p1281_p8 }
  0x36   :  { %329 = vmatmul.mubr.f32.vlgmr.msra.gmra.mrb[0].mxu0 %v36_v31 }
  0x9a   :  { %v340_v43 = vpop.permute.xlu0 %339 }
  0x9f   :  { %v345_v49 = vpop.permute.xlu0 %344 }
 0x109   :  { %v330_v35 = vpop.f32.mrb[0].mxu0 }
 0x10a   :  { %v332_v36 = vpop.f32.mrb[1].mxu0  ;;  %1138 = vmatprep.subr.msk.mxu1 %vm352_vm1, %v330_v35 }
 0x10b   :  { %1139 = vmatpush3.msk.msra.mxu1 %vm352_vm1, %v330_v35 }
 0x10c   :  { %1141 = vmatmul.mubr.msk.f32.vlgmr.msra.gmra.mrb[0].mxu1 %vm347_vm0, %v335_v34  ;;  %1215 = vmatprep.subr.bf16.mxu1 %v1308_v39 }
 0x10d   :  { %1147 = vmatprep.mubr.msk.f32.mxu1 %vm1309_vm2, %v1310_v41  ;;  %1217 = vmatpush3.bf16.msra.mxu1 %v1216_v40 }
 0x10e   :  { %1218 = vmatprep.subr.bf16.mxu1 %v1308_v39 }
 0x1df   :  { %v1142_v42 = vpop.f32.mrb[0].mxu1 }
 0x1e0   :  { %v422_v44 = vpop.f32.mrb[1].mxu1  ;;  %v428_v53 = vadd.f32 %v1142_v42, %v345_v49 }
 0x1e1   :  { %v423_v45 = vadd.f32 %v422_v44, %v340_v43 }
 0x1e3   :  { %1254 = vtanh.f32 %v423_v45 }
 0x1e4   :  { %1256 = vtanh.f32 %v428_v53 }
 0x1ed   :  { %v1255_v52 = vpop.eup %1254 }
 0x1ee   :  { %1148 = vmatmul.mubr.msk.f32.vlgmr.msra.gmra.mrb[2].mxu1 %vm435_vm3, %v1255_v52  ;;  %v520_v55 = vrot.slane %v1255_v52, 2  ;;  %v600_v59 = vrot.slane %v1255_v52, 4  ;;  %v680_v63 = vrot.slane %v1255_v52, 6  ;;  %v1257_v5 = vpop.eup %1256 }
 0x1ef   :  { %1220 = vmatpush3.bf16.msra.mxu1 %v1219_v48  ;;  %1154 = vmatprep.mubr.msk.f32.mxu1 %vm1309_vm2, %v1310_v41  ;;  %v840_v7 = vrot.slane %v1257_v5, 2  ;;  %v920_v11 = vrot.slane %v1257_v5, 4  ;;  %v1000_v12 = vrot.slane %v1257_v5, 6 }
 0x1f0   :  { %1221 = vmatprep.subr.bf16.mxu1 %v1308_v39 }
 0x1f2   :  { %1155 = vmatmul.mubr.msk.f32.vlgmr.msra.gmra.mrb[4].mxu1 %vm435_vm3, %v520_v55 }
 0x1f3   :  { %1223 = vmatpush3.bf16.msra.mxu1 %v1222_v54  ;;  %1161 = vmatprep.mubr.msk.f32.mxu1 %vm1309_vm2, %v1310_v41 }
 0x1f4   :  { %1224 = vmatprep.subr.bf16.mxu1 %v1308_v39 }
 0x1f6   :  { %1162 = vmatmul.mubr.msk.f32.vlgmr.msra.gmra.mrb[6].mxu1 %vm435_vm3, %v600_v59 }
 0x1f7   :  { %1226 = vmatpush3.bf16.msra.mxu1 %v1225_v58  ;;  %1168 = vmatprep.mubr.msk.f32.mxu1 %vm1309_vm2, %v1310_v41 }
 0x1f8   :  { %1227 = vmatprep.subr.bf16.mxu1 %v1308_v39 }
 0x1fa   :  { %1169 = vmatmul.mubr.msk.f32.vlgmr.msra.gmra.mrb[8].mxu1 %vm435_vm3, %v680_v63 }
 0x1fb   :  { %1229 = vmatpush3.bf16.msra.mxu1 %v1228_v62  ;;  %1175 = vmatprep.mubr.msk.f32.mxu1 %vm1309_vm2, %v1310_v41 }
 0x1fc   :  { %1230 = vmatprep.subr.bf16.mxu1 %v1308_v39 }
 0x1fe   :  { %1176 = vmatmul.mubr.msk.f32.vlgmr.msra.gmra.mrb[10].mxu1 %vm435_vm3, %v1257_v5 }
 0x1ff   :  { %1232 = vmatpush3.bf16.msra.mxu1 %v1231_v2  ;;  %1182 = vmatprep.mubr.msk.f32.mxu1 %vm1309_vm2, %v1310_v41 }
 0x200   :  { %1233 = vmatprep.subr.bf16.mxu1 %v1308_v39 }
 0x202   :  { %1183 = vmatmul.mubr.msk.f32.vlgmr.msra.gmra.mrb[12].mxu1 %vm435_vm3, %v840_v7 }
 0x203   :  { %1235 = vmatpush3.bf16.msra.mxu1 %v1234_v6  ;;  %1189 = vmatprep.mubr.msk.f32.mxu1 %vm1309_vm2, %v1310_v41 }
 0x204   :  { %1236 = vmatprep.subr.bf16.mxu1 %v1308_v39 }
 0x206   :  { %1190 = vmatmul.mubr.msk.f32.vlgmr.msra.gmra.mrb[14].mxu1 %vm435_vm3, %v920_v11 }
 0x207   :  { %1238 = vmatpush3.bf16.msra.mxu1 %v1237_v10  ;;  %1196 = vmatprep.mubr.msk.f32.mxu1 %vm1309_vm2, %v1310_v41 }
 0x20a   :  { %1197 = vmatmul.mubr.msk.f32.vlgmr.msra.gmra.mrb[16].mxu1 %vm435_vm3, %v1000_v12 }
 0x2c1   :  { %v505_v13 = vpop.f32.mrb[2].mxu1 }
 0x2c2   :  { %514 = vrot.lane.b32.xlu1 %v505_v13, %s1311_s3  ;;  %v1149_v14 = vpop.f32.mrb[3].mxu1 }
 0x2c5   :  { %v589_v15 = vpop.f32.mrb[4].mxu1 }
 0x2c6   :  { %594 = vrot.lane.b32.xlu1 %v589_v15, %s1311_s3  ;;  %v1156_v16 = vpop.f32.mrb[5].mxu1 }
 0x2c9   :  { %v669_v17 = vpop.f32.mrb[6].mxu1 }
 0x2ca   :  { %674 = vrot.lane.b32.xlu0 %v669_v17, %s1311_s3  ;;  %v1163_v18 = vpop.f32.mrb[7].mxu1 }
 0x2cd   :  { %v749_v19 = vpop.f32.mrb[8].mxu1 }
 0x2ce   :  { %754 = vrot.lane.b32.xlu1 %v749_v19, %s1311_s3  ;;  %v1170_v20 = vpop.f32.mrb[9].mxu1 }
 0x2d1   :  { %v829_v21 = vpop.f32.mrb[10].mxu1 }
 0x2d2   :  { %834 = vrot.lane.b32.xlu0 %v829_v21, %s1311_s3  ;;  %v1177_v22 = vpop.f32.mrb[11].mxu1 }
 0x2d5   :  { %v909_v23 = vpop.f32.mrb[12].mxu1 }
 0x2d6   :  { %914 = vrot.lane.b32.xlu1 %v909_v23, %s1311_s3  ;;  %v1184_v24 = vpop.f32.mrb[13].mxu1 }
 0x2d9   :  { %v989_v25 = vpop.f32.mrb[14].mxu1 }
 0x2da   :  { %994 = vrot.lane.b32.xlu0 %v989_v25, %s1311_s3  ;;  %v1191_v26 = vpop.f32.mrb[15].mxu1 }
 0x2dd   :  { %v1069_v27 = vpop.f32.mrb[16].mxu1 }
 0x2de   :  { %1074 = vrot.lane.b32.xlu1 %v1069_v27, %s1311_s3  ;;  %v1198_v28 = vpop.f32.mrb[17].mxu1 }
 0x334   :  { %v515_v29 = vpop.permute.xlu1 %514 }
 0x335   :  { %v517_v32 = vadd.f32 %v1103_v30, %v515_v29 }
 0x338   :  { %v595_v31 = vpop.permute.xlu1 %594 }
 0x339   :  { %v597_v34 = vadd.f32 %v595_v31, %v517_v32 }
 0x33c   :  { %v675_v33 = vpop.permute.xlu0 %674 }
 0x33d   :  { %v677_v36 = vadd.f32 %v675_v33, %v597_v34 }
 0x340   :  { %v755_v35 = vpop.permute.xlu1 %754 }
 0x341   :  { %v757_v38 = vadd.f32 %v755_v35, %v677_v36 }
 0x344   :  { %v835_v37 = vpop.permute.xlu0 %834 }
 0x345   :  { %v837_v40 = vadd.f32 %v835_v37, %v757_v38 }
 0x348   :  { %v915_v39 = vpop.permute.xlu1 %914 }
 0x349   :  { %v917_v42 = vadd.f32 %v915_v39, %v837_v40 }
 0x34c   :  { %v995_v41 = vpop.permute.xlu0 %994 }
 0x34d   :  { %v997_v43 = vadd.f32 %v995_v41, %v917_v42 }
 0x350   :  { %v1075_v44 = vpop.permute.xlu1 %1074 }
 0x351   :  { %v1077_v45 = vadd.f32 %v1075_v44, %v997_v43 }
 0x353   :  { %1079 = vrot.lane.b32.xlu0 %v1077_v45, %s1312_s14 }
 0x3c5   :  { %v1080_v46 = vpop.permute.xlu0 %1079 }
 0x3c6   :  { %1083 = vst.msk [vmem:[#allocation5] sm:$0x3] %vm1082_vm4, %v1080_v46 }
 0x3c7   :  { %1291 = shalt.err (!%p1288_p12)
}
 0x3c8   :  { %s1292_s19 = scalar_lea.hbm %s1504_s4, 32 }
 0x3c9   :  { %p1293_p13 = scmp.ne.s32.totalorder %s1504_s4, %s1292_s19  ;;  %p1296_p0 = scmp.lt.u32.totalorder %s1292_s19, %s1504_s4 }
 0x3cb   :  { %p1298_p1 = pnand %p1296_p0, %p1293_p13 }
 0x3cd   :  { %1301 = shalt.err (!%p1298_p1)
}
 0x3ce   :  { %1093 = dma.vmem_to_hbm [thread:$0]  %s1091_s16, 32, %s1504_s4, [#allocation4]  }
 0x3cf   :  { %1304 = dma.done.wait [#allocation4], 32  }
 0x3d0   :  { %1305 = vsyncadd [#allocation4], 4294967264 }
 0x3d1   :  { %1097 = vsyncpa [#allocation3], 1 }
 0x3d2   :  { %1098 = vsyncpa [#allocation4], 1 }

</bundles_post_ra>
